<compile_context>
chip_gen: v7x
topology: tpu7x:2x2x1
jax: 0.10.0
libtpu: 0.0.40
codegen_flags: <defaults>
</compile_context>

<pallas_src>
import functools
import math

import jax
import jax.numpy as jnp
from jax.experimental import pallas as pl
from jax.experimental.pallas import tpu as pltpu

MIN_LOG_STD = -20.0
MAX_LOG_STD = 2.0
# Python float (math.log), NOT a jnp scalar -> folded as an immediate constant.
_HALF_LOG_2PI = 0.5 * math.log(2.0 * math.pi)


def _round_up(x, m):
    return ((x + m - 1) // m) * m


def _actor_sac_kernel(state_ref, w1_ref, b1_ref, w2_ref, b2_ref,
                      whead_ref, bhead_ref, eps_ref,
                      action_ref, logprob_ref, *, n_actions, a_pad):
    # Feature MLP: bf16 matmuls on the MXU with f32 accumulation (bf16 is the
    # MXU's native width on v5e/v6e/v7x); bias add + ReLU on the VPU in f32.
    x = state_ref[...].astype(jnp.bfloat16)
    h = jnp.dot(x, w1_ref[...], preferred_element_type=jnp.float32) + b1_ref[...]
    h = jnp.maximum(h, 0.0).astype(jnp.bfloat16)
    h = jnp.dot(h, w2_ref[...], preferred_element_type=jnp.float32) + b2_ref[...]
    h = jnp.maximum(h, 0.0).astype(jnp.bfloat16)

    # Fused mu / log_std head.  whead columns are padded so mu lives at lane 0
    # and log_std at lane a_pad (a multiple of 128): both slices below are
    # vreg-group selections with zero cross-lane movement.
    head = jnp.dot(h, whead_ref[...], preferred_element_type=jnp.float32) + bhead_ref[...]
    mu = head[:, :n_actions]
    log_std = jnp.clip(head[:, a_pad:a_pad + n_actions], MIN_LOG_STD, MAX_LOG_STD)
    std = jnp.exp(log_std)

    # Reparameterized sample + tanh squash (all f32, width = n_actions; the
    # partially-filled vregs cost the same VPU op count as full ones).
    eps = eps_ref[...]
    z = mu + std * eps
    action = jnp.tanh(z)

    # Normal(mu, std).log_prob(z): since z = mu + std*eps, (z - mu)/std == eps
    # exactly, so no subtract/divide is needed.
    nlp = -0.5 * (eps * eps) - log_std - _HALF_LOG_2PI
    lp = nlp - jnp.log(1.0 - action * action + 1e-7)

    action_ref[...] = action
    # Minimal-byte log_prob writeback: a (block_b, 1) column (no 128-lane slab).
    logprob_ref[...] = jnp.sum(lp, axis=-1, keepdims=True)


def _vmem_limit_bytes(block_b, n_states, H, A, a_pad):
    # bf16 weights (single-buffered) + f32 biases.
    weights = 2 * (n_states * H + H * H + H * 2 * a_pad) + 4 * (2 * H + 2 * a_pad)
    # Double-buffered streamed tiles: state, eps, action, log_prob (all f32).
    streams = 2 * 4 * block_b * (n_states + A + A + 1)
    # Headroom for live h / head values the compiler may park in VMEM.
    live = 4 * block_b * (2 * H + 2 * a_pad)
    est = weights + streams + live
    # >= defaults everywhere, < v7x's 64 MiB physical VMEM.
    return int(min(max(2 * est, 32 * 2**20), 48 * 2**20))


def actor_sac_forward(state, params, eps, *, block_b=None):
    """Runs the fused ActorSAC forward pass on TPU via Pallas. Returns (action, log_prob)."""
    B, n_states = state.shape
    A = eps.shape[1]
    H = params["w1"].shape[1]
    a_pad = params["whead"].shape[1] // 2  # 128-aligned column group width

    # Batch tile: multiple of the 8-row f32 sublane, capped at 1024 rows, and
    # split so B > 8 always produces >= 2 tiles (keeps both v7x TensorCores
    # busy via dimension_semantics=("parallel",)).
    if block_b is None:
        if B <= 8:
            block_b = B                       # block dims == array dims (tiny case)
        else:
            block_b = min(1024, _round_up((B + 1) // 2, 8))
    num_tiles = pl.cdiv(B, block_b)           # partial last tile allowed: OOB reads
    grid = (num_tiles,)                       # hit discarded rows, OOB writes dropped

    tile = lambda i: (i, 0)                   # streamed operands: tile-by-tile
    resident = lambda i: (0, 0)               # weights/biases: VMEM-resident

    def res_spec(shape):
        # Constant index_map -> fetched once; single-buffer to free VMEM headroom.
        return pl.BlockSpec(shape, resident, pipeline_mode=pl.Buffered(1))

    kernel = functools.partial(_actor_sac_kernel, n_actions=A, a_pad=a_pad)

    action, log_prob = pl.pallas_call(
        kernel,
        grid=grid,
        in_specs=[
            pl.BlockSpec((block_b, n_states), tile),   # state (f32, streamed)
            res_spec((n_states, H)),                   # w1 (bf16)
            res_spec((1, H)),                          # b1 (f32)
            res_spec((H, H)),                          # w2 (bf16)
            res_spec((1, H)),                          # b2 (f32)
            res_spec((H, 2 * a_pad)),                  # whead = [Wmu | 0 | Wls | 0] (bf16)
            res_spec((1, 2 * a_pad)),                  # bhead (f32)
            pl.BlockSpec((block_b, A), tile),          # eps (f32, streamed)
        ],
        out_specs=(
            pl.BlockSpec((block_b, A), tile),          # action
            pl.BlockSpec((block_b, 1), tile),          # log_prob (minimal writeback)
        ),
        out_shape=(
            jax.ShapeDtypeStruct((B, A), jnp.float32),
            jax.ShapeDtypeStruct((B, 1), jnp.float32),
        ),
        compiler_params=pltpu.CompilerParams(
            # Batch tiles are independent -> shard across both TCs on v7x megacore.
            dimension_semantics=("parallel",),
            vmem_limit_bytes=_vmem_limit_bytes(block_b, n_states, H, A, a_pad),
        ),
    )(state, params["w1"], params["b1"], params["w2"], params["b2"],
      params["whead"], params["bhead"], eps)

    return action, log_prob


# ----------------------- parameter initialization -----------------------

def _orthogonal(key, out_f, in_f, gain=1.0):
    # mimic nn.init.orthogonal_ for a (out_f, in_f) weight, then transpose
    # to our (in_f, out_f) layout.
    a = jax.random.normal(key, (max(out_f, in_f), min(out_f, in_f)), jnp.float32)
    q, r = jnp.linalg.qr(a)
    q = q * jnp.sign(jnp.diag(r))
    w = q[:out_f, :in_f] if out_f >= in_f else q[:in_f, :out_f].T
    return (gain * w).T.astype(jnp.float32)  # (in_f, out_f)


def _kaiming_uniform(key, in_f, out_f):
    # PyTorch default nn.Linear init (kaiming uniform, a=sqrt(5)) -> U(-1/sqrt(in), 1/sqrt(in))
    bound = 1.0 / math.sqrt(in_f)
    return jax.random.uniform(key, (in_f, out_f), jnp.float32, -bound, bound)


def make_params(key, n_states, hidden_units, n_actions):
    ks = jax.random.split(key, 6)
    bound1 = 1.0 / math.sqrt(n_states)
    bound2 = 1.0 / math.sqrt(hidden_units)
    # Heads: orthogonal(std=1.0) weights, bias = 1e-6 (reset_parameters).
    # Fused + padded to two 128-lane-aligned column groups:
    #   columns [0, A)            -> mu head
    #   columns [a_pad, a_pad+A)  -> log_std head          (rest are zero)
    a_pad = _round_up(max(n_actions, 1), 128)
    wmu = _orthogonal(ks[4], n_actions, hidden_units, gain=1.0)   # (H, A)
    wls = _orthogonal(ks[5], n_actions, hidden_units, gain=1.0)   # (H, A)
    whead = jnp.zeros((hidden_units, 2 * a_pad), jnp.float32)
    whead = whead.at[:, :n_actions].set(wmu)
    whead = whead.at[:, a_pad:a_pad + n_actions].set(wls)
    bhead = jnp.zeros((1, 2 * a_pad), jnp.float32)
    bhead = bhead.at[:, :n_actions].set(1e-6)
    bhead = bhead.at[:, a_pad:a_pad + n_actions].set(1e-6)
    return {
        # MXU weights stored bf16 (native MXU width); biases kept f32.
        "w1": _kaiming_uniform(ks[0], n_states, hidden_units).astype(jnp.bfloat16),
        "b1": jax.random.uniform(ks[1], (1, hidden_units), jnp.float32, -bound1, bound1),
        "w2": _kaiming_uniform(ks[2], hidden_units, hidden_units).astype(jnp.bfloat16),
        "b2": jax.random.uniform(ks[3], (1, hidden_units), jnp.float32, -bound2, bound2),
        "whead": whead.astype(jnp.bfloat16),
        "bhead": bhead,
    }


if __name__ == "__main__":
    B, N_STATES, HIDDEN, N_ACTIONS = 4, 16, 32, 8

    key = jax.random.PRNGKey(0)
    k_params, k_state, k_eps = jax.random.split(key, 3)

    params = make_params(k_params, N_STATES, HIDDEN, N_ACTIONS)
    state = jax.random.normal(k_state, (B, N_STATES), jnp.float32)
    eps = jax.random.normal(k_eps, (B, N_ACTIONS), jnp.float32)  # rsample noise

    action, log_prob = jax.jit(actor_sac_forward)(state, params, eps)
    jax.block_until_ready((action, log_prob))

    assert action.shape == (B, N_ACTIONS) and log_prob.shape == (B, 1)
    assert bool(jnp.all(jnp.isfinite(action))) and bool(jnp.all(jnp.isfinite(log_prob)))
    assert bool(jnp.all(jnp.abs(action) <= 1.0))
    print("KERNEL_OK")
</pallas_src>

<mosaic_0001>
module attributes {stable_mosaic.version = 11 : i64} {
  func.func @_actor_sac_kernel(%arg0: i32, %arg1: memref<4x16xf32, #tpu.memory_space<vmem>>, %arg2: memref<16x32xbf16, #tpu.memory_space<vmem>>, %arg3: memref<1x32xf32, #tpu.memory_space<vmem>>, %arg4: memref<32x32xbf16, #tpu.memory_space<vmem>>, %arg5: memref<1x32xf32, #tpu.memory_space<vmem>>, %arg6: memref<32x256xbf16, #tpu.memory_space<vmem>>, %arg7: memref<1x256xf32, #tpu.memory_space<vmem>>, %arg8: memref<4x8xf32, #tpu.memory_space<vmem>>, %arg9: memref<4x8xf32, #tpu.memory_space<vmem>>, %arg10: memref<4x1xf32, #tpu.memory_space<vmem>>) attributes {dimension_semantics = [#tpu.dimension_semantics<parallel>], iteration_bounds = array<i64: 1>, scalar_prefetch = 0 : i64, scratch_operands = 0 : i64, tpu.core_type = #tpu.core_type<tc>, window_params = [{transform_indices = @transform_0, window_bounds = array<i64: 4, 16>}, {pipeline_mode = #tpu.pipeline_mode<synchronous>, transform_indices = @transform_1, window_bounds = array<i64: 16, 32>}, {pipeline_mode = #tpu.pipeline_mode<synchronous>, transform_indices = @transform_2, window_bounds = array<i64: 1, 32>}, {pipeline_mode = #tpu.pipeline_mode<synchronous>, transform_indices = @transform_3, window_bounds = array<i64: 32, 32>}, {pipeline_mode = #tpu.pipeline_mode<synchronous>, transform_indices = @transform_4, window_bounds = array<i64: 1, 32>}, {pipeline_mode = #tpu.pipeline_mode<synchronous>, transform_indices = @transform_5, window_bounds = array<i64: 32, 256>}, {pipeline_mode = #tpu.pipeline_mode<synchronous>, transform_indices = @transform_6, window_bounds = array<i64: 1, 256>}, {transform_indices = @transform_7, window_bounds = array<i64: 4, 8>}, {transform_indices = @transform_8, window_bounds = array<i64: 4, 8>}, {transform_indices = @transform_9, window_bounds = array<i64: 4, 1>}]} {
    %c0 = arith.constant 0 : index
    %c0_0 = arith.constant 0 : index
    %0 = vector.load %arg1[%c0, %c0_0] : memref<4x16xf32, #tpu.memory_space<vmem>>, vector<4x16xf32>
    %1 = arith.truncf %0 : vector<4x16xf32> to vector<4x16xbf16>
    %c0_1 = arith.constant 0 : index
    %c0_2 = arith.constant 0 : index
    %2 = vector.load %arg2[%c0_1, %c0_2] : memref<16x32xbf16, #tpu.memory_space<vmem>>, vector<16x32xbf16>
    %cst = arith.constant dense<0.000000e+00> : vector<4x32xf32>
    %3 = tpu.matmul %1, %2, %cst {dimension_numbers = #tpu.dot_dimension_numbers<[1], [0], [0], [1], [0, 0, 1, 1], [], []>} : vector<4x16xbf16>, vector<16x32xbf16>, vector<4x32xf32> -> vector<4x32xf32>
    %c0_3 = arith.constant 0 : index
    %c0_4 = arith.constant 0 : index
    %4 = vector.load %arg3[%c0_3, %c0_4] : memref<1x32xf32, #tpu.memory_space<vmem>>, vector<1x32xf32>
    %5 = vector.broadcast %4 : vector<1x32xf32> to vector<4x32xf32>
    %6 = arith.addf %3, %5 : vector<4x32xf32>
    %cst_5 = arith.constant 0.000000e+00 : f32
    %7 = vector.broadcast %cst_5 : f32 to vector<4x32xf32>
    %8 = arith.maximumf %6, %7 : vector<4x32xf32>
    %9 = arith.truncf %8 : vector<4x32xf32> to vector<4x32xbf16>
    %c0_6 = arith.constant 0 : index
    %c0_7 = arith.constant 0 : index
    %10 = vector.load %arg4[%c0_6, %c0_7] : memref<32x32xbf16, #tpu.memory_space<vmem>>, vector<32x32xbf16>
    %cst_8 = arith.constant dense<0.000000e+00> : vector<4x32xf32>
    %11 = tpu.matmul %9, %10, %cst_8 {dimension_numbers = #tpu.dot_dimension_numbers<[1], [0], [0], [1], [0, 0, 1, 1], [], []>} : vector<4x32xbf16>, vector<32x32xbf16>, vector<4x32xf32> -> vector<4x32xf32>
    %c0_9 = arith.constant 0 : index
    %c0_10 = arith.constant 0 : index
    %12 = vector.load %arg5[%c0_9, %c0_10] : memref<1x32xf32, #tpu.memory_space<vmem>>, vector<1x32xf32>
    %13 = vector.broadcast %12 : vector<1x32xf32> to vector<4x32xf32>
    %14 = arith.addf %11, %13 : vector<4x32xf32>
    %cst_11 = arith.constant 0.000000e+00 : f32
    %15 = vector.broadcast %cst_11 : f32 to vector<4x32xf32>
    %16 = arith.maximumf %14, %15 : vector<4x32xf32>
    %17 = arith.truncf %16 : vector<4x32xf32> to vector<4x32xbf16>
    %c0_12 = arith.constant 0 : index
    %c0_13 = arith.constant 0 : index
    %18 = vector.load %arg6[%c0_12, %c0_13] : memref<32x256xbf16, #tpu.memory_space<vmem>>, vector<32x256xbf16>
    %cst_14 = arith.constant dense<0.000000e+00> : vector<4x256xf32>
    %19 = tpu.matmul %17, %18, %cst_14 {dimension_numbers = #tpu.dot_dimension_numbers<[1], [0], [0], [1], [0, 0, 1, 1], [], []>} : vector<4x32xbf16>, vector<32x256xbf16>, vector<4x256xf32> -> vector<4x256xf32>
    %c0_15 = arith.constant 0 : index
    %c0_16 = arith.constant 0 : index
    %20 = vector.load %arg7[%c0_15, %c0_16] : memref<1x256xf32, #tpu.memory_space<vmem>>, vector<1x256xf32>
    %21 = vector.broadcast %20 : vector<1x256xf32> to vector<4x256xf32>
    %22 = arith.addf %19, %21 : vector<4x256xf32>
    %23 = vector.extract_strided_slice %22 {offsets = [0, 0], sizes = [4, 8], strides = [1, 1]} : vector<4x256xf32> to vector<4x8xf32>
    %24 = vector.extract_strided_slice %22 {offsets = [0, 128], sizes = [4, 8], strides = [1, 1]} : vector<4x256xf32> to vector<4x8xf32>
    %cst_17 = arith.constant -2.000000e+01 : f32
    %cst_18 = arith.constant 2.000000e+00 : f32
    %25 = vector.broadcast %cst_17 : f32 to vector<4x8xf32>
    %26 = arith.maximumf %25, %24 : vector<4x8xf32>
    %27 = vector.broadcast %cst_18 : f32 to vector<4x8xf32>
    %28 = arith.minimumf %27, %26 : vector<4x8xf32>
    %29 = math.exp %28 : vector<4x8xf32>
    %c0_19 = arith.constant 0 : index
    %c0_20 = arith.constant 0 : index
    %30 = vector.load %arg8[%c0_19, %c0_20] : memref<4x8xf32, #tpu.memory_space<vmem>>, vector<4x8xf32>
    %31 = arith.mulf %29, %30 : vector<4x8xf32>
    %32 = arith.addf %23, %31 : vector<4x8xf32>
    %33 = math.tanh %32 : vector<4x8xf32>
    %34 = arith.mulf %30, %30 : vector<4x8xf32>
    %cst_21 = arith.constant -5.000000e-01 : f32
    %35 = vector.broadcast %cst_21 : f32 to vector<4x8xf32>
    %36 = arith.mulf %35, %34 : vector<4x8xf32>
    %37 = arith.subf %36, %28 : vector<4x8xf32>
    %cst_22 = arith.constant 0.918938517 : f32
    %38 = vector.broadcast %cst_22 : f32 to vector<4x8xf32>
    %39 = arith.subf %37, %38 : vector<4x8xf32>
    %40 = arith.mulf %33, %33 : vector<4x8xf32>
    %cst_23 = arith.constant 1.000000e+00 : f32
    %41 = vector.broadcast %cst_23 : f32 to vector<4x8xf32>
    %42 = arith.subf %41, %40 : vector<4x8xf32>
    %cst_24 = arith.constant 1.000000e-07 : f32
    %43 = vector.broadcast %cst_24 : f32 to vector<4x8xf32>
    %44 = arith.addf %42, %43 : vector<4x8xf32>
    %45 = math.log %44 : vector<4x8xf32>
    %46 = arith.subf %39, %45 : vector<4x8xf32>
    %c0_25 = arith.constant 0 : index
    %c0_26 = arith.constant 0 : index
    %47 = vector.load %arg9[%c0_25, %c0_26] : memref<4x8xf32, #tpu.memory_space<vmem>>, vector<4x8xf32>
    tpu.vector_store %arg9[%c0_25, %c0_26], %33 {strides = array<i32>} : memref<4x8xf32, #tpu.memory_space<vmem>>, vector<4x8xf32>,
    %cst_27 = arith.constant dense<0.000000e+00> : vector<4xf32>
    %48 = vector.multi_reduction <add>, %46, %cst_27 [1] : vector<4x8xf32> to vector<4xf32>
    %49 = vector.shape_cast %48 : vector<4xf32> to vector<4x1xf32>
    %c0_28 = arith.constant 0 : index
    %c0_29 = arith.constant 0 : index
    %50 = vector.load %arg10[%c0_28, %c0_29] : memref<4x1xf32, #tpu.memory_space<vmem>>, vector<4x1xf32>
    tpu.vector_store %arg10[%c0_28, %c0_29], %49 {strides = array<i32>} : memref<4x1xf32, #tpu.memory_space<vmem>>, vector<4x1xf32>,
    return
  }
  func.func @transform_0(%arg0: i32) -> (i32, i32) {
    %c0_i32 = arith.constant 0 : i32
    %c0_i32_0 = arith.constant 0 : i32
    return %arg0, %c0_i32 : i32, i32
  }
  func.func @transform_1(%arg0: i32) -> (i32, i32) {
    %c0_i32 = arith.constant 0 : i32
    %c0_i32_0 = arith.constant 0 : i32
    %c0_i32_1 = arith.constant 0 : i32
    return %c0_i32, %c0_i32_0 : i32, i32
  }
  func.func @transform_2(%arg0: i32) -> (i32, i32) {
    %c0_i32 = arith.constant 0 : i32
    %c0_i32_0 = arith.constant 0 : i32
    %c0_i32_1 = arith.constant 0 : i32
    return %c0_i32, %c0_i32_0 : i32, i32
  }
  func.func @transform_3(%arg0: i32) -> (i32, i32) {
    %c0_i32 = arith.constant 0 : i32
    %c0_i32_0 = arith.constant 0 : i32
    %c0_i32_1 = arith.constant 0 : i32
    return %c0_i32, %c0_i32_0 : i32, i32
  }
  func.func @transform_4(%arg0: i32) -> (i32, i32) {
    %c0_i32 = arith.constant 0 : i32
    %c0_i32_0 = arith.constant 0 : i32
    %c0_i32_1 = arith.constant 0 : i32
    return %c0_i32, %c0_i32_0 : i32, i32
  }
  func.func @transform_5(%arg0: i32) -> (i32, i32) {
    %c0_i32 = arith.constant 0 : i32
    %c0_i32_0 = arith.constant 0 : i32
    %c0_i32_1 = arith.constant 0 : i32
    return %c0_i32, %c0_i32_0 : i32, i32
  }
  func.func @transform_6(%arg0: i32) -> (i32, i32) {
    %c0_i32 = arith.constant 0 : i32
    %c0_i32_0 = arith.constant 0 : i32
    %c0_i32_1 = arith.constant 0 : i32
    return %c0_i32, %c0_i32_0 : i32, i32
  }
  func.func @transform_7(%arg0: i32) -> (i32, i32) {
    %c0_i32 = arith.constant 0 : i32
    %c0_i32_0 = arith.constant 0 : i32
    return %arg0, %c0_i32 : i32, i32
  }
  func.func @transform_8(%arg0: i32) -> (i32, i32) {
    %c0_i32 = arith.constant 0 : i32
    %c0_i32_0 = arith.constant 0 : i32
    return %arg0, %c0_i32 : i32, i32
  }
  func.func @transform_9(%arg0: i32) -> (i32, i32) {
    %c0_i32 = arith.constant 0 : i32
    %c0_i32_0 = arith.constant 0 : i32
    return %arg0, %c0_i32 : i32, i32
  }
}

</mosaic_0001>

<bundles_post_ra>
// kernel: actor_sac_forward.1
= control target key start
LH: loop header
LB: loop body
LE: loop exit
PB: predicated region body
PF: predicated region fallthrough
CT: control target
= control target key end

     0   :  { %15 = vsyncpa [#allocation3], 0  ;;  %s705_s0 = inlined_call_operand.hbm [shape: f32[4,16], index: 0, kind: input, shape index: {}]   ;;  %s706_s1 = inlined_call_operand.hbm [shape: bf16[16,32], index: 1, kind: input, shape index: {}]   ;;  %s707_s2 = inlined_call_operand.hbm [shape: f32[1,32], index: 2, kind: input, shape index: {}]   ;;  %s708_s3 = inlined_call_operand.vmem [shape: bf16[32,32], index: 3, kind: input, shape index: {}]   ;;  %s709_s4 = inlined_call_operand.hbm [shape: f32[1,32], index: 4, kind: input, shape index: {}]   ;;  %s710_s5 = inlined_call_operand.hbm [shape: bf16[32,256], index: 5, kind: input, shape index: {}]   ;;  %s711_s6 = inlined_call_operand.vmem [shape: f32[1,256], index: 6, kind: input, shape index: {}]   ;;  %s712_s7 = inlined_call_operand.vmem [shape: f32[4,8], index: 7, kind: input, shape index: {}]   ;;  %s713_s8 = inlined_call_operand.hbm [shape: f32[4,8], index: 8, kind: output, shape index: {0}]   ;;  %s714_s9 = inlined_call_operand.vmem [shape: f32[4,1], index: 9, kind: output, shape index: {1}]  }
   0x1   :  { %16 = vsyncpa [#allocation6], 0 }
   0x2   :  { %17 = vsyncpa [#allocation9], 0 }
   0x3   :  { %18 = vsyncpa [#allocation4], 0  ;;  %s553_s30 = smov [#allocation5]   ;;  %s413_s13 = scalar_lea.hbm %s706_s1, 128 }
   0x4   :  { %s34_s10 = sshll.u32 %s553_s30, 4  ;;  %p414_p0 = scmp.ne.s32.totalorder %s706_s1, %s413_s13  ;;  %s35_s10 = int_to_ptr.vmem [resolvable:$true] %s34_s10 }
   0x5   :  { %p417_p1 = scmp.lt.u32.totalorder %s413_s13, %s706_s1 }
   0x7   :  { %p419_p2 = pnand %p417_p1, %p414_p0 }
   0x9   :  { %422 = shalt.err (!%p419_p2)
}
   0xa   :  { %s423_s18 = scalar_lea.vmem %s35_s10, 128  ;;  %p428_p4 = scmp.lt.s32.totalorder %s35_s10, %s35_s10 }
   0xb   :  { %p424_p3 = scmp.ne.s32.totalorder %s35_s10, %s423_s18  ;;  %p429_p5 = scmp.lt.s32.totalorder %s423_s18, %s423_s18 }
   0xd   :  { %p430_p6 = por %p429_p5, %p428_p4 }
   0xf   :  { %p431_p7 = pnand %p430_p6, %p424_p3 }
  0x11   :  { %434 = shalt.err (!%p431_p7)
}
  0x12   :  { %s554_s19 = smov 64   ;;  %s555_s20 = smov 4  }
  0x13   :  { %40 = dma.hbm_to_vmem [thread:$0]  %s706_s1, 128, %s35_s10, [#allocation6], %s554_s19, %s554_s19, %s555_s20  }
  0x14   :  { %s556_s23 = smov [#allocation8]   ;;  %s557_s25 = smov [#allocation2]  }
  0x15   :  { %s59_s24 = sshll.u32 %s556_s23, 4  ;;  %s25_s26 = sshll.u32 %s557_s25, 4  ;;  %s60_s24 = int_to_ptr.vmem [resolvable:$true] %s59_s24  ;;  %s26_s26 = int_to_ptr.vmem [resolvable:$true] %s25_s26 }
  0x16   :  { %s435_s29 = scalar_lea.hbm %s709_s4, 16 }
  0x17   :  { %p436_p8 = scmp.ne.s32.totalorder %s709_s4, %s435_s29  ;;  %p439_p9 = scmp.lt.u32.totalorder %s435_s29, %s709_s4 }
  0x19   :  { %p441_p10 = pnand %p439_p9, %p436_p8 }
  0x1b   :  { %444 = shalt.err (!%p441_p10)
}
  0x1c   :  { %s445_s1 = scalar_lea.vmem %s60_s24, 16  ;;  %s449_s10 = scalar_lea.vmem %s60_s24, 32 }
  0x1d   :  { %p446_p11 = scmp.ne.s32.totalorder %s60_s24, %s445_s1  ;;  %p450_p12 = scmp.lt.s32.totalorder %s60_s24, %s60_s24 }
  0x1e   :  { %p451_p13 = scmp.lt.s32.totalorder %s449_s10, %s445_s1 }
  0x20   :  { %p452_p0 = por %p451_p13, %p450_p12 }
  0x22   :  { %p453_p1 = pnand %p452_p0, %p446_p11 }
  0x24   :  { %456 = shalt.err (!%p453_p1)
}
  0x25   :  { %62 = dma.hbm_to_vmem [thread:$0]  %s709_s4, 16, %s60_s24, [#allocation9]  }
  0x26   :  { %s457_s18 = scalar_lea.hbm %s705_s0, 64 }
  0x27   :  { %p458_p2 = scmp.ne.s32.totalorder %s705_s0, %s457_s18  ;;  %p461_p3 = scmp.lt.u32.totalorder %s457_s18, %s705_s0 }
  0x29   :  { %p463_p4 = pnand %p461_p3, %p458_p2 }
  0x2b   :  { %466 = shalt.err (!%p463_p4)
}
  0x2c   :  { %s467_s23 = scalar_lea.vmem %s26_s26, 64  ;;  %p472_p6 = scmp.lt.s32.totalorder %s26_s26, %s26_s26 }
  0x2d   :  { %p468_p5 = scmp.ne.s32.totalorder %s26_s26, %s467_s23  ;;  %p473_p7 = scmp.lt.s32.totalorder %s467_s23, %s467_s23 }
  0x2f   :  { %p474_p8 = por %p473_p7, %p472_p6 }
  0x31   :  { %p475_p9 = pnand %p474_p8, %p468_p5 }
  0x33   :  { %478 = shalt.err (!%p475_p9)
}
  0x34   :  { %28 = dma.hbm_to_vmem [thread:$0]  %s705_s0, 64, %s26_s26, [#allocation3]  }
  0x35   :  { %s558_s25 = smov [#allocation7]   ;;  %s559_s28 = smov [#allocation10]  }
  0x36   :  { %s47_s27 = sshll.u32 %s558_s25, 4  ;;  %s68_s29 = sshll.u32 %s559_s28, 4  ;;  %s48_s27 = int_to_ptr.vmem [resolvable:$true] %s47_s27  ;;  %s69_s29 = int_to_ptr.vmem [resolvable:$true] %s68_s29 }
  0x37   :  { %s479_s12 = scalar_lea.hbm %s707_s2, 16 }
  0x38   :  { %p480_p10 = scmp.ne.s32.totalorder %s707_s2, %s479_s12  ;;  %p483_p11 = scmp.lt.u32.totalorder %s479_s12, %s707_s2 }
  0x3a   :  { %p485_p12 = pnand %p483_p11, %p480_p10 }
  0x3c   :  { %488 = shalt.err (!%p485_p12)
}
  0x3d   :  { %s489_s0 = scalar_lea.vmem %s48_s27, 16  ;;  %s493_s26 = scalar_lea.vmem %s48_s27, 32 }
  0x3e   :  { %p490_p13 = scmp.ne.s32.totalorder %s48_s27, %s489_s0  ;;  %p494_p0 = scmp.lt.s32.totalorder %s48_s27, %s48_s27 }
  0x3f   :  { %p495_p1 = scmp.lt.s32.totalorder %s493_s26, %s489_s0 }
  0x41   :  { %p496_p2 = por %p495_p1, %p494_p0 }
  0x43   :  { %p497_p3 = pnand %p496_p2, %p490_p13 }
  0x45   :  { %500 = shalt.err (!%p497_p3)
}
  0x46   :  { %50 = dma.hbm_to_vmem [thread:$0]  %s707_s2, 16, %s48_s27, [#allocation6]  }
  0x47   :  { %s501_s19 = scalar_lea.hbm %s710_s5, 512 }
  0x48   :  { %p502_p4 = scmp.ne.s32.totalorder %s710_s5, %s501_s19  ;;  %p505_p5 = scmp.lt.u32.totalorder %s501_s19, %s710_s5 }
  0x4a   :  { %p507_p6 = pnand %p505_p5, %p502_p4 }
  0x4c   :  { %510 = shalt.err (!%p507_p6)
}
  0x4d   :  { %s511_s4 = scalar_lea.vmem %s69_s29, 512  ;;  %p516_p8 = scmp.lt.s32.totalorder %s69_s29, %s69_s29 }
  0x4e   :  { %p512_p7 = scmp.ne.s32.totalorder %s69_s29, %s511_s4  ;;  %p517_p9 = scmp.lt.s32.totalorder %s511_s4, %s511_s4 }
  0x50   :  { %p518_p10 = por %p517_p9, %p516_p8 }
  0x52   :  { %p519_p11 = pnand %p518_p10, %p512_p7 }
  0x54   :  { %522 = shalt.err (!%p519_p11)
}
  0x55   :  { %s560_s2 = smov 128   ;;  %s561_s24 = smov 8  }
  0x56   :  { %74 = dma.hbm_to_vmem [thread:$0]  %s710_s5, 512, %s69_s29, [#allocation9], %s560_s2, %s560_s2, %s561_s24  }
  0x57   :  { %545 = dma.done.wait [#allocation3], 64  }
  0x58   :  { %546 = vsyncadd [#allocation3], 4294967232 }
  0x59   :  { %547 = dma.done.wait [#allocation6], 144  }
  0x5a   :  { %548 = vsyncadd [#allocation6], 4294967152 }
  0x5b   :  { %549 = dma.done.wait [#allocation9], 528  }
  0x5c   :  { %550 = vsyncadd [#allocation9], 4294966768  ;;  %v562_v0 = vmov 0.0   ;;  %vm563_vm0 = vmmov 0   ;;  %v398_v1 = vld [vmem:[#allocation5] sm:$0xff]   ;;  %vm112_vm1 = vcmask 130048   ;;  %v233_v27 = vlaneseq }
  0x5d   :  { %371 = vmatprep.subr.bf16.mxu0 %v562_v0  ;;  %373 = vmatprep.mubr.msk.bf16.mxu0 %vm563_vm0, %v562_v0  ;;  %v95_v2 = vld [vmem:[#allocation2] sm:$0xf]  ;;  %v399_v4 = vld [vmem:[%s708_s3] sm:$0xff]   ;;  %v400_v5 = vld [vmem:[%s708_s3 + $0x8] sm:$0xff]   ;;  %vm181_vm2 = vcmask 261120   ;;  %v564_v18 = vmov 0  }
  0x5e   :  { %377 = vmatprep.subr.bf16.mxu1 %v562_v0  ;;  %381 = vmatprep.mubr.msk.bf16.mxu1 %vm563_vm0, %v562_v0  ;;  %v96_v3 = vpack.c.bf16 %v95_v2, %v95_v2  ;;  %v401_v6 = vld [vmem:[#allocation10] ss:$8 sps:$4 sm:$0xff]   ;;  %v403_v7 = vld [vmem:[#allocation10 + $0x4] ss:$8 sps:$4 sm:$0xff]   ;;  %v353_v8 = vld [vmem:[#allocation7] ss:$0 sm:$0xff] }
  0x5f   :  { %372 = vmatpush3.bf16.msra.mxu0 %v398_v1  ;;  %378 = vmatpush3.bf16.msra.mxu1 %v399_v4  ;;  %v406_v16 = vld [vmem:[#allocation10 + $0x14] ss:$8 sps:$4 sm:$0xff]   ;;  %v404_v17 = vld [vmem:[#allocation10 + $0x10] ss:$8 sps:$4 sm:$0xff]   ;;  %v234_v28 = vshrl.u32 %v233_v27, 7  ;;  %vm325_vm3 = vcmask 60416  }
  0x60   :  { %379 = vmatprep.subr.bf16.mxu1 %v562_v0  ;;  %266 = vmatprep.subr.bf16.mxu0 %v403_v7  ;;  %v356_v19 = vld [vmem:[#allocation8] ss:$0 sm:$0xff]  ;;  %v231_v30 = vld [vmem:[%s711_s6] sm:$0x3]  ;;  %s565_s6 = smov [#allocation11]  }
  0x61   :  { %v239_v29 = vsub.s32 1, %v234_v28  ;;  %v235_v40 = vsub.s32 0, %v234_v28  ;;  %v311_v43 = vld [vmem:[%s712_s7] sm:$0xf]  ;;  %s338_s7 = sshll.u32 %s565_s6, 4  ;;  %s339_s7 = int_to_ptr.vmem [resolvable:$true] %s338_s7 }
  0x62   :  { %374 = vmatmul.mubr.msk.bf16.vlgmr.msra.gmra.mrb[0].mxu0 %vm112_vm1, %v96_v3  ;;  %v315_v51 = vmul.f32 %v311_v43, %v311_v43  ;;  %s523_s1 = scalar_lea.vmem %s339_s7, 64  ;;  %p528_p13 = scmp.lt.s32.totalorder %s339_s7, %s339_s7 }
  0x63   :  { %380 = vmatpush3.bf16.msra.mxu1 %v400_v5  ;;  %267 = vmatpush1.bf16.msra.mxu0 %v401_v6  ;;  %v240_v31 = vrot.slane %v231_v30, %v239_v29  ;;  %v236_v41 = vrot.slane %v231_v30, %v235_v40  ;;  %p524_p12 = scmp.ne.s32.totalorder %s339_s7, %s523_s1  ;;  %p529_p0 = scmp.lt.s32.totalorder %s523_s1, %s523_s1 }
  0x64   :  { %268 = vmatprep.subr.bf16.mxu0 %v406_v16  ;;  %298 = vmatprep.mubr.bf16.mxu0 %v564_v18  ;;  %v316_v52 = vmul.f32 -0.5, %v315_v51 }
  0x65   :  { %p530_p1 = por %p529_p0, %p528_p13 }
  0x67   :  { %269 = vmatpush1.bf16.msra.mxu0 %v404_v17  ;;  %p531_p2 = pnand %p530_p1, %p524_p12 }
 0x135   :  { %v150_v9 = vpop.f32.mrb[0].mxu0 }
 0x136   :  { %v151_v10 = vadd.f32 %v353_v8, %v150_v9  ;;  %v375_v11 = vpop.f32.mrb[1].mxu0 }
 0x137   :  { %v153_v12 = vpop.f32.mrb[2].mxu0 }
 0x138   :  { %v156_v13 = vmax.f32 %v151_v10, 0.0  ;;  %v376_v14 = vpop.f32.mrb[3].mxu0 }
 0x13a   :  { %v157_v15 = vpack.c.bf16 %v156_v13, %v156_v13 }
 0x13c   :  { %382 = vmatmul.mubr.msk.bf16.vlgmr.msra.gmra.mrb[0].mxu1 %vm181_vm2, %v157_v15 }
 0x20f   :  { %v219_v20 = vpop.f32.mrb[0].mxu1 }
 0x210   :  { %v220_v21 = vadd.f32 %v356_v19, %v219_v20  ;;  %v383_v22 = vpop.f32.mrb[1].mxu1 }
 0x211   :  { %v222_v23 = vpop.f32.mrb[2].mxu1 }
 0x212   :  { %v225_v24 = vmax.f32 %v220_v21, 0.0  ;;  %v384_v25 = vpop.f32.mrb[3].mxu1 }
 0x214   :  { %v226_v26 = vpack.c.bf16 %v225_v24, %v225_v24 }
 0x216   :  { %364 = vmatmul.mubr.msk.bf16.vlgmr.msra.gmra.mrb[4].mxu0 %vm181_vm2, %v226_v26 }
 0x2e9   :  { %v300_v32 = vpop.f32.mrb[4].mxu0 }
 0x2ea   :  { %v302_v33 = vpop.f32.mrb[5].mxu0  ;;  %v301_v44 = vadd.f32 %v300_v32, %v236_v41 }
 0x2eb   :  { %v303_v34 = vadd.f32 %v302_v33, %v240_v31  ;;  %v304_v35 = vpop.f32.mrb[6].mxu0 }
 0x2ec   :  { %v305_v36 = vpop.f32.mrb[7].mxu0 }
 0x2ed   :  { %v307_v37 = vmax.f32 %v303_v34, -20.0 }
 0x2ef   :  { %v308_v38 = vmin.f32 %v307_v37, 2.0 }
 0x2f1   :  { %v309_v39 = vmul.f32 1.442695, %v308_v38  ;;  %v317_v53 = vsub.f32 %v316_v52, %v308_v38 }
 0x2f3   :  { %407 = vpow2.f32 %v309_v39  ;;  %v365_v55 = vadd.f32 -0.9189385, %v317_v53 }
 0x2fd   :  { %v408_v42 = vpop.eup %407 }
 0x2fe   :  { %v312_v45 = vmul.f32 %v408_v42, %v311_v43 }
 0x300   :  { %v313_v46 = vadd.f32 %v312_v45, %v301_v44 }
 0x302   :  { %409 = vtanh.f32 %v313_v46 }
 0x30c   :  { %v410_v47 = vpop.eup %409 }
 0x30d   :  { %v319_v48 = vmul.f32 %v410_v47, %v410_v47  ;;  %326 = vst.msk [vmem:[#allocation11] sm:$0xf] %vm325_vm3, %v410_v47 }
 0x30f   :  { %v320_v49 = vsub.f32 1.0, %v319_v48 }
 0x311   :  { %v321_v50 = vadd.f32 1e-07, %v320_v49 }
 0x313   :  { %411 = vlog2.f32 %v321_v50 }
 0x31d   :  { %v412_v54 = vpop.eup %411 }
 0x31e   :  { %v323_v56 = vmul.f32 0.6931472, %v412_v54 }
 0x320   :  { %v324_v57 = vsub.f32 %v365_v55, %v323_v56 }
 0x322   :  { %v327_v58 = vsel %vm325_vm3, %v324_v57, 0.0 }
 0x323   :  { %328 = vadd.xlane.f32.xlu0 %v327_v58 }
 0x324   :  { %534 = shalt.err (!%p531_p2)
}
 0x325   :  { %s535_s0 = scalar_lea.hbm %s713_s8, 64 }
 0x326   :  { %p536_p3 = scmp.ne.s32.totalorder %s713_s8, %s535_s0  ;;  %p539_p4 = scmp.lt.u32.totalorder %s535_s0, %s713_s8 }
 0x328   :  { %p541_p5 = pnand %p539_p4, %p536_p3 }
 0x32a   :  { %544 = shalt.err (!%p541_p5)
}
 0x32b   :  { %341 = dma.vmem_to_hbm [thread:$0]  %s339_s7, 64, %s713_s8, [#allocation4]   ;;  %vm330_vm4 = vcmask 3072  }
 0x3b0   :  { %v329_v59 = vpop.xlane.xlu0 %328 }
 0x3b1   :  { %331 = vst.msk [vmem:[%s714_s9] sm:$0xf] %vm330_vm4, %v329_v59 }
 0x3b2   :  { %551 = dma.done.wait [#allocation4], 64  }
 0x3b3   :  { %552 = vsyncadd [#allocation4], 4294967232 }
 0x3b4   :  { %349 = vsyncpa [#allocation3], 1 }
 0x3b5   :  { %350 = vsyncpa [#allocation6], 1 }
 0x3b6   :  { %351 = vsyncpa [#allocation9], 1 }
 0x3b7   :  { %352 = vsyncpa [#allocation4], 1 }

</bundles_post_ra>
